<compile_context>
chip_gen: v5e
topology: v5e:2x2
jax: 0.10.0
libtpu: 0.0.40
codegen_flags: <defaults>
</compile_context>

<pallas_src>
import math

import numpy as np

import jax
import jax.numpy as jnp
from jax.experimental import pallas as pl
from jax.experimental.pallas import tpu as pltpu

# -----------------------------------------------------------------------------
# Model hyper-parameters (small, consistent with the module's forward).
# -----------------------------------------------------------------------------
B = 2          # batch
C = 4          # input channels
H = W = 16     # spatial
P = 4          # patch size
NT = (H // P) * (W // P)     # tokens per image = 16
PIN = C * P * P              # flattened patch input dim = 64
D = 32                       # embed dim
DH = 64                      # MLP hidden dim
POUT = P * P                 # decoder output per-token (1-channel 4x4 patch) = 16
DPAD = 128                   # decoder head padded to full lane width
LN_EPS = 1e-5


# -----------------------------------------------------------------------------
# Fused encoder-decoder kernel (all stacked tokens in one grid step).
# -----------------------------------------------------------------------------
def swin_enc_dec_kernel(
    patches_ref,                                    # (T, PIN) f32, T = bps * NT
    mask_ref,                                       # (T, T) f32 additive bias
    we_ref, be_ref,                                 # patch embed (bf16 / f32)
    wqkv_ref, bqkv_ref,                             # fused Q|K|V (LN1 + scale folded)
    wo_ref, bo_ref,                                 # attention output proj
    w1_ref, bm1_ref, w2_ref, bm2_ref,               # MLP (LN2 folded into w1/bm1)
    wd_ref, bd_ref,                                 # decoder head (padded to 128)
    out_ref,                                        # (T, DPAD) f32
):
    f32 = jnp.float32
    bf16 = jnp.bfloat16
    d = wo_ref.shape[0]                              # embed dim

    def layer_norm(v):
        # One-pass stats (two independent XLU reductions); LN affine is folded
        # into the following linear at pack time.  Clamp guards the rare
        # negative (E[x^2] - mu^2) from f32 cancellation.
        mu = jnp.mean(v, axis=-1, keepdims=True)
        ms = jnp.mean(v * v, axis=-1, keepdims=True)
        var = jnp.maximum(ms - mu * mu, 0.0)
        return (v - mu) * jax.lax.rsqrt(var + LN_EPS)

    # ---- encoder: patch embedding (conv4x4/s4 == matmul over im2col patches)
    x = jnp.dot(patches_ref[...].astype(bf16), we_ref[...],
                preferred_element_type=f32) + be_ref[...]

    # ---- Swin block: attention branch (single fused QKV matmul)
    h = layer_norm(x).astype(bf16)
    qkv = jnp.dot(h, wqkv_ref[...], preferred_element_type=f32) + bqkv_ref[...]
    q = qkv[:, :d].astype(bf16)          # 1/sqrt(D) scale already folded in
    k = qkv[:, d:2 * d].astype(bf16)
    v = qkv[:, 2 * d:].astype(bf16)

    # Scores: contract both operands' last dims (no explicit k.T transpose).
    s = jax.lax.dot_general(q, k, (((1,), (1,)), ((), ())),
                            preferred_element_type=f32)          # (T, T)
    s = s + mask_ref[...]                 # block-diagonal additive bias (const)

    s = s - jnp.max(s, axis=-1, keepdims=True)
    e = jnp.exp(s)
    attn = e * pl.reciprocal(jnp.sum(e, axis=-1, keepdims=True), approx=True)
    a = jnp.dot(attn.astype(bf16), v, preferred_element_type=f32)      # (T, D)
    a = jnp.dot(a.astype(bf16), wo_ref[...],
                preferred_element_type=f32) + bo_ref[...]
    x = x + a

    # ---- Swin block: MLP branch
    h2 = layer_norm(x).astype(bf16)
    m = jnp.dot(h2, w1_ref[...], preferred_element_type=f32) + bm1_ref[...]
    # NOTE: PyTorch nn.GELU defaults to the exact erf form; tanh approx differs
    # at the ~1e-3 level but lowers cleanly on the TPU EUP.
    m = jax.nn.gelu(m, approximate=True)
    m = jnp.dot(m.astype(bf16), w2_ref[...],
                preferred_element_type=f32) + bm2_ref[...]
    x = x + m

    # ---- decoder: per-token linear projection to a 4x4 alpha patch.
    # Head is zero-padded to 128 output lanes -> unmasked full-lane store.
    out_ref[...] = jnp.dot(x.astype(bf16), wd_ref[...],
                           preferred_element_type=f32) + bd_ref[...]


def _full_spec(shape):
    """BlockSpec covering the whole (grid-invariant) parameter array."""
    nd = len(shape)
    return pl.BlockSpec(shape, lambda i, _nd=nd: (0,) * _nd)


def swin_encoder_decoder(x_nchw, packed_params, *, batch_per_step=None):
    """Forward pass. x_nchw: [B, C, H, W] float32 -> [B, 1, H, W] float32.

    batch_per_step: None / B -> one grid step with all batches stacked.  This
    is the right choice on v5e/v6e (single TensorCore) AND on v7x at this
    problem size: per-core work is far below the per-grid-step overhead and
    splitting would duplicate the parameter DMAs on both cores.
    """
    b, c, h, w = x_nchw.shape
    hp, wp = h // P, w // P
    nt = hp * wp

    if batch_per_step is None:
        batch_per_step = b
    assert b % batch_per_step == 0
    steps = b // batch_per_step
    t = batch_per_step * nt           # stacked tokens per grid step

    # Host-side im2col for non-overlapping 4x4 patches; flatten order is
    # (ph, pw, C).  With allow_input_fusion below, XLA may fold this
    # reshape/transpose chain into the pallas_call operand.
    # TODO(synk): a real PyTorch Conv2d weight port must permute the
    # patch-embed weight rows (Conv2d flattens as (C, kh, kw)).
    patches = x_nchw.reshape(b, c, hp, P, wp, P)
    patches = patches.transpose(0, 2, 4, 3, 5, 1)                 # B,Hp,Wp,ph,pw,C
    patches = patches.reshape(b * nt, P * P * c).astype(jnp.float32)

    # Block-diagonal attention mask as a trace-time constant additive bias:
    # tokens attend only within their own batch element.
    tok_img = np.arange(t) // nt
    mask_np = np.where(tok_img[:, None] == tok_img[None, :],
                       0.0, -1e30).astype(np.float32)
    mask = jnp.asarray(mask_np)

    n_params = len(packed_params)
    in_specs = ([pl.BlockSpec((t, PIN), lambda i: (i, 0)),
                 _full_spec(mask.shape)]
                + [_full_spec(p.shape) for p in packed_params])

    # Advisory cost estimate so XLA schedules surrounding ops around this call.
    param_bytes = sum(int(p.size) * p.dtype.itemsize for p in packed_params)
    flops_step = (2 * t * (PIN * D + D * 3 * D + D * D + D * DH + DH * D
                           + D * DPAD)
                  + 2 * 2 * t * t * D)                 # scores + attn@V
    cost = pl.CostEstimate(
        flops=int(steps * flops_step),
        transcendentals=int(steps * (t * t + t * DH)),  # softmax exp + gelu
        bytes_accessed=int(4 * b * nt * (PIN + DPAD) + 4 * t * t + param_bytes),
    )

    dec = pl.pallas_call(
        swin_enc_dec_kernel,
        out_shape=jax.ShapeDtypeStruct((b * nt, DPAD), jnp.float32),
        grid_spec=pltpu.PrefetchScalarGridSpec(
            num_scalar_prefetch=0,
            grid=(steps,),
            in_specs=in_specs,
            out_specs=pl.BlockSpec((t, DPAD), lambda i: (i, 0)),
        ),
        compiler_params=pltpu.CompilerParams(
            dimension_semantics=("parallel",),
            # Only the patches operand has a non-trivial producer worth fusing.
            allow_input_fusion=[True] + [False] * (1 + n_params),
        ),
        cost_estimate=cost,
    )(patches, mask, *packed_params)

    # un-patch: [B*NT, 128] -> slice valid 16 cols -> [B, 1, H, W]
    out = dec[:, :POUT].reshape(b, hp, wp, P, P)
    out = out.transpose(0, 1, 3, 2, 4).reshape(b, 1, h, w)
    return out


# -----------------------------------------------------------------------------
# Deterministic synthetic parameter init (shapes from the module config).
# -----------------------------------------------------------------------------
def init_params(key):
    ks = jax.random.split(key, 12)

    def lin(k, fan_in, fan_out):
        scale = 1.0 / math.sqrt(fan_in)
        w = jax.random.normal(k, (fan_in, fan_out), jnp.float32) * scale
        b_ = jnp.zeros((1, fan_out), jnp.float32)
        return w, b_

    we, be = lin(ks[0], PIN, D)           # patch embed
    g1 = jnp.ones((1, D), jnp.float32)
    bt1 = jnp.zeros((1, D), jnp.float32)
    wq, bq = lin(ks[1], D, D)
    wk, bk = lin(ks[2], D, D)
    wv, bv = lin(ks[3], D, D)
    wo, bo = lin(ks[4], D, D)
    g2 = jnp.ones((1, D), jnp.float32)
    bt2 = jnp.zeros((1, D), jnp.float32)
    w1, bm1 = lin(ks[5], D, DH)
    w2, bm2 = lin(ks[6], DH, D)
    wd, bd = lin(ks[7], D, POUT)          # decoder head
    return (we, be, g1, bt1, wq, bq, wk, bk, wv, bv, wo, bo,
            g2, bt2, w1, bm1, w2, bm2, wd, bd)


def pack_params(raw):
    """One-time, exact algebraic repacking (outside the hot path):
      * fuse Q/K/V into one (D, 3D) projection,
      * fold LN1 gamma/beta into wqkv/bqkv and LN2 gamma/beta into w1/bm1,
      * fold the 1/sqrt(D) attention scale into the Q columns,
      * zero-pad the decoder head to 128 output lanes (lane-dense stores),
      * pre-cast all matmul weights to bf16 (biases stay f32)."""
    (we, be, g1, bt1, wq, bq, wk, bk, wv, bv, wo, bo,
     g2, bt2, w1, bm1, w2, bm2, wd, bd) = raw

    d = wq.shape[0]
    scale = 1.0 / math.sqrt(d)

    wqkv0 = jnp.concatenate([wq, wk, wv], axis=1)     # (D, 3D)
    bqkv0 = jnp.concatenate([bq, bk, bv], axis=1)     # (1, 3D)
    # LN1 affine folded: n @ (diag(g1) @ W) + (bt1 @ W + b)
    bqkv = bt1 @ wqkv0 + bqkv0
    wqkv = g1.T * wqkv0
    # attention scale folded into the Q columns (weights AND bias)
    wqkv = wqkv.at[:, :d].multiply(scale)
    bqkv = bqkv.at[:, :d].multiply(scale)

    # LN2 affine folded into the first MLP linear
    bm1p = bt2 @ w1 + bm1
    w1p = g2.T * w1

    # decoder head padded to full 128-lane width (wrapper slices [:, :POUT])
    pad = DPAD - wd.shape[1]
    wd_p = jnp.pad(wd, ((0, 0), (0, pad)))
    bd_p = jnp.pad(bd, ((0, 0), (0, pad)))

    bf = jnp.bfloat16
    return (we.astype(bf), be,
            wqkv.astype(bf), bqkv,
            wo.astype(bf), bo,
            w1p.astype(bf), bm1p,
            w2.astype(bf), bm2,
            wd_p.astype(bf), bd_p)


if __name__ == "__main__":
    key = jax.random.PRNGKey(0)
    kx, kp = jax.random.split(key)

    x = jax.random.normal(kx, (B, C, H, W), jnp.float32)   # NCHW like PyTorch
    packed = pack_params(init_params(kp))

    # Single grid step with all batches stacked (preferred on v5e/v6e/v7x at
    # this problem size -- see swin_encoder_decoder docstring).
    fwd = jax.jit(lambda xx: swin_encoder_decoder(xx, packed))

    out = jax.block_until_ready(fwd(x))

    assert out.shape == (B, 1, H, W), out.shape
    assert bool(jnp.all(jnp.isfinite(out)))
    print("KERNEL_OK")
</pallas_src>

<mosaic_0001>
module attributes {stable_mosaic.version = 11 : i64} {
  func.func @swin_enc_dec_kernel(%arg0: i32, %arg1: memref<32x64xf32, #tpu.memory_space<vmem>>, %arg2: memref<32x32xf32, #tpu.memory_space<vmem>>, %arg3: memref<64x32xbf16, #tpu.memory_space<vmem>>, %arg4: memref<1x32xf32, #tpu.memory_space<vmem>>, %arg5: memref<32x96xbf16, #tpu.memory_space<vmem>>, %arg6: memref<1x96xf32, #tpu.memory_space<vmem>>, %arg7: memref<32x32xbf16, #tpu.memory_space<vmem>>, %arg8: memref<1x32xf32, #tpu.memory_space<vmem>>, %arg9: memref<32x64xbf16, #tpu.memory_space<vmem>>, %arg10: memref<1x64xf32, #tpu.memory_space<vmem>>, %arg11: memref<64x32xbf16, #tpu.memory_space<vmem>>, %arg12: memref<1x32xf32, #tpu.memory_space<vmem>>, %arg13: memref<32x128xbf16, #tpu.memory_space<vmem>>, %arg14: memref<1x128xf32, #tpu.memory_space<vmem>>, %arg15: memref<32x128xf32, #tpu.memory_space<vmem>>) attributes {dimension_semantics = [#tpu.dimension_semantics<parallel>], iteration_bounds = array<i64: 1>, scalar_prefetch = 0 : i64, scratch_operands = 0 : i64, tpu.core_type = #tpu.core_type<tc>, window_params = [{transform_indices = @transform_0, window_bounds = array<i64: 32, 64>}, {pipeline_mode = #tpu.pipeline_mode<synchronous>, transform_indices = @transform_1, window_bounds = array<i64: 32, 32>}, {pipeline_mode = #tpu.pipeline_mode<synchronous>, transform_indices = @transform_2, window_bounds = array<i64: 64, 32>}, {pipeline_mode = #tpu.pipeline_mode<synchronous>, transform_indices = @transform_3, window_bounds = array<i64: 1, 32>}, {pipeline_mode = #tpu.pipeline_mode<synchronous>, transform_indices = @transform_4, window_bounds = array<i64: 32, 96>}, {pipeline_mode = #tpu.pipeline_mode<synchronous>, transform_indices = @transform_5, window_bounds = array<i64: 1, 96>}, {pipeline_mode = #tpu.pipeline_mode<synchronous>, transform_indices = @transform_6, window_bounds = array<i64: 32, 32>}, {pipeline_mode = #tpu.pipeline_mode<synchronous>, transform_indices = @transform_7, window_bounds = array<i64: 1, 32>}, {pipeline_mode = #tpu.pipeline_mode<synchronous>, transform_indices = @transform_8, window_bounds = array<i64: 32, 64>}, {pipeline_mode = #tpu.pipeline_mode<synchronous>, transform_indices = @transform_9, window_bounds = array<i64: 1, 64>}, {pipeline_mode = #tpu.pipeline_mode<synchronous>, transform_indices = @transform_10, window_bounds = array<i64: 64, 32>}, {pipeline_mode = #tpu.pipeline_mode<synchronous>, transform_indices = @transform_11, window_bounds = array<i64: 1, 32>}, {pipeline_mode = #tpu.pipeline_mode<synchronous>, transform_indices = @transform_12, window_bounds = array<i64: 32, 128>}, {pipeline_mode = #tpu.pipeline_mode<synchronous>, transform_indices = @transform_13, window_bounds = array<i64: 1, 128>}, {transform_indices = @transform_14, window_bounds = array<i64: 32, 128>}]} {
    %c0 = arith.constant 0 : index
    %c0_0 = arith.constant 0 : index
    %0 = vector.load %arg1[%c0, %c0_0] : memref<32x64xf32, #tpu.memory_space<vmem>>, vector<32x64xf32>
    %1 = arith.truncf %0 : vector<32x64xf32> to vector<32x64xbf16>
    %c0_1 = arith.constant 0 : index
    %c0_2 = arith.constant 0 : index
    %2 = vector.load %arg3[%c0_1, %c0_2] : memref<64x32xbf16, #tpu.memory_space<vmem>>, vector<64x32xbf16>
    %cst = arith.constant dense<0.000000e+00> : vector<32x32xf32>
    %3 = tpu.matmul %1, %2, %cst {dimension_numbers = #tpu.dot_dimension_numbers<[1], [0], [0], [1], [0, 0, 1, 1], [], []>} : vector<32x64xbf16>, vector<64x32xbf16>, vector<32x32xf32> -> vector<32x32xf32>
    %c0_3 = arith.constant 0 : index
    %c0_4 = arith.constant 0 : index
    %4 = vector.load %arg4[%c0_3, %c0_4] : memref<1x32xf32, #tpu.memory_space<vmem>>, vector<1x32xf32>
    %5 = vector.broadcast %4 : vector<1x32xf32> to vector<32x32xf32>
    %6 = arith.addf %3, %5 : vector<32x32xf32>
    %cst_5 = arith.constant dense<0.000000e+00> : vector<32xf32>
    %7 = vector.multi_reduction <add>, %6, %cst_5 [1] : vector<32x32xf32> to vector<32xf32>
    %8 = vector.shape_cast %7 : vector<32xf32> to vector<32x1xf32>
    %cst_6 = arith.constant 3.200000e+01 : f32
    %9 = vector.broadcast %cst_6 : f32 to vector<32x1xf32>
    %10 = arith.divf %8, %9 : vector<32x1xf32>
    %11 = arith.mulf %6, %6 : vector<32x32xf32>
    %cst_7 = arith.constant dense<0.000000e+00> : vector<32xf32>
    %12 = vector.multi_reduction <add>, %11, %cst_7 [1] : vector<32x32xf32> to vector<32xf32>
    %13 = vector.shape_cast %12 : vector<32xf32> to vector<32x1xf32>
    %cst_8 = arith.constant 3.200000e+01 : f32
    %14 = vector.broadcast %cst_8 : f32 to vector<32x1xf32>
    %15 = arith.divf %13, %14 : vector<32x1xf32>
    %16 = arith.mulf %10, %10 : vector<32x1xf32>
    %17 = arith.subf %15, %16 : vector<32x1xf32>
    %cst_9 = arith.constant 0.000000e+00 : f32
    %18 = vector.broadcast %cst_9 : f32 to vector<32x1xf32>
    %19 = arith.maximumf %17, %18 : vector<32x1xf32>
    %20 = vector.broadcast %10 : vector<32x1xf32> to vector<32x32xf32>
    %21 = arith.subf %6, %20 : vector<32x32xf32>
    %cst_10 = arith.constant 9.99999974E-6 : f32
    %22 = vector.broadcast %cst_10 : f32 to vector<32x1xf32>
    %23 = arith.addf %19, %22 : vector<32x1xf32>
    %24 = math.rsqrt %23 : vector<32x1xf32>
    %25 = vector.broadcast %24 : vector<32x1xf32> to vector<32x32xf32>
    %26 = arith.mulf %21, %25 : vector<32x32xf32>
    %27 = arith.truncf %26 : vector<32x32xf32> to vector<32x32xbf16>
    %c0_11 = arith.constant 0 : index
    %c0_12 = arith.constant 0 : index
    %28 = vector.load %arg5[%c0_11, %c0_12] : memref<32x96xbf16, #tpu.memory_space<vmem>>, vector<32x96xbf16>
    %cst_13 = arith.constant dense<0.000000e+00> : vector<32x96xf32>
    %29 = tpu.matmul %27, %28, %cst_13 {dimension_numbers = #tpu.dot_dimension_numbers<[1], [0], [0], [1], [0, 0, 1, 1], [], []>} : vector<32x32xbf16>, vector<32x96xbf16>, vector<32x96xf32> -> vector<32x96xf32>
    %c0_14 = arith.constant 0 : index
    %c0_15 = arith.constant 0 : index
    %30 = vector.load %arg6[%c0_14, %c0_15] : memref<1x96xf32, #tpu.memory_space<vmem>>, vector<1x96xf32>
    %31 = vector.broadcast %30 : vector<1x96xf32> to vector<32x96xf32>
    %32 = arith.addf %29, %31 : vector<32x96xf32>
    %33 = vector.extract_strided_slice %32 {offsets = [0, 0], sizes = [32, 32], strides = [1, 1]} : vector<32x96xf32> to vector<32x32xf32>
    %34 = arith.truncf %33 : vector<32x32xf32> to vector<32x32xbf16>
    %35 = vector.extract_strided_slice %32 {offsets = [0, 32], sizes = [32, 32], strides = [1, 1]} : vector<32x96xf32> to vector<32x32xf32>
    %36 = arith.truncf %35 : vector<32x32xf32> to vector<32x32xbf16>
    %37 = vector.extract_strided_slice %32 {offsets = [0, 64], sizes = [32, 32], strides = [1, 1]} : vector<32x96xf32> to vector<32x32xf32>
    %38 = arith.truncf %37 : vector<32x32xf32> to vector<32x32xbf16>
    %cst_16 = arith.constant dense<0.000000e+00> : vector<32x32xf32>
    %39 = tpu.matmul %34, %36, %cst_16 {dimension_numbers = #tpu.dot_dimension_numbers<[1], [1], [0], [0], [0, 0, 1, 0], [], []>} : vector<32x32xbf16>, vector<32x32xbf16>, vector<32x32xf32> -> vector<32x32xf32>
    %c0_17 = arith.constant 0 : index
    %c0_18 = arith.constant 0 : index
    %40 = vector.load %arg2[%c0_17, %c0_18] : memref<32x32xf32, #tpu.memory_space<vmem>>, vector<32x32xf32>
    %41 = arith.addf %39, %40 : vector<32x32xf32>
    %cst_19 = arith.constant dense<0xFF800000> : vector<32xf32>
    %42 = vector.multi_reduction <maximumf>, %41, %cst_19 [1] : vector<32x32xf32> to vector<32xf32>
    %43 = vector.shape_cast %42 : vector<32xf32> to vector<32x1xf32>
    %44 = vector.broadcast %43 : vector<32x1xf32> to vector<32x32xf32>
    %45 = arith.subf %41, %44 : vector<32x32xf32>
    %46 = math.exp %45 : vector<32x32xf32>
    %cst_20 = arith.constant dense<0.000000e+00> : vector<32xf32>
    %47 = vector.multi_reduction <add>, %46, %cst_20 [1] : vector<32x32xf32> to vector<32xf32>
    %48 = vector.shape_cast %47 : vector<32xf32> to vector<32x1xf32>
    %49 = tpu.reciprocal %48 {approx = true} : vector<32x1xf32> -> vector<32x1xf32>
    %50 = vector.broadcast %49 : vector<32x1xf32> to vector<32x32xf32>
    %51 = arith.mulf %46, %50 : vector<32x32xf32>
    %52 = arith.truncf %51 : vector<32x32xf32> to vector<32x32xbf16>
    %cst_21 = arith.constant dense<0.000000e+00> : vector<32x32xf32>
    %53 = tpu.matmul %52, %38, %cst_21 {dimension_numbers = #tpu.dot_dimension_numbers<[1], [0], [0], [1], [0, 0, 1, 1], [], []>} : vector<32x32xbf16>, vector<32x32xbf16>, vector<32x32xf32> -> vector<32x32xf32>
    %54 = arith.truncf %53 : vector<32x32xf32> to vector<32x32xbf16>
    %c0_22 = arith.constant 0 : index
    %c0_23 = arith.constant 0 : index
    %55 = vector.load %arg7[%c0_22, %c0_23] : memref<32x32xbf16, #tpu.memory_space<vmem>>, vector<32x32xbf16>
    %cst_24 = arith.constant dense<0.000000e+00> : vector<32x32xf32>
    %56 = tpu.matmul %54, %55, %cst_24 {dimension_numbers = #tpu.dot_dimension_numbers<[1], [0], [0], [1], [0, 0, 1, 1], [], []>} : vector<32x32xbf16>, vector<32x32xbf16>, vector<32x32xf32> -> vector<32x32xf32>
    %c0_25 = arith.constant 0 : index
    %c0_26 = arith.constant 0 : index
    %57 = vector.load %arg8[%c0_25, %c0_26] : memref<1x32xf32, #tpu.memory_space<vmem>>, vector<1x32xf32>
    %58 = vector.broadcast %57 : vector<1x32xf32> to vector<32x32xf32>
    %59 = arith.addf %56, %58 : vector<32x32xf32>
    %60 = arith.addf %6, %59 : vector<32x32xf32>
    %cst_27 = arith.constant dense<0.000000e+00> : vector<32xf32>
    %61 = vector.multi_reduction <add>, %60, %cst_27 [1] : vector<32x32xf32> to vector<32xf32>
    %62 = vector.shape_cast %61 : vector<32xf32> to vector<32x1xf32>
    %cst_28 = arith.constant 3.200000e+01 : f32
    %63 = vector.broadcast %cst_28 : f32 to vector<32x1xf32>
    %64 = arith.divf %62, %63 : vector<32x1xf32>
    %65 = arith.mulf %60, %60 : vector<32x32xf32>
    %cst_29 = arith.constant dense<0.000000e+00> : vector<32xf32>
    %66 = vector.multi_reduction <add>, %65, %cst_29 [1] : vector<32x32xf32> to vector<32xf32>
    %67 = vector.shape_cast %66 : vector<32xf32> to vector<32x1xf32>
    %cst_30 = arith.constant 3.200000e+01 : f32
    %68 = vector.broadcast %cst_30 : f32 to vector<32x1xf32>
    %69 = arith.divf %67, %68 : vector<32x1xf32>
    %70 = arith.mulf %64, %64 : vector<32x1xf32>
    %71 = arith.subf %69, %70 : vector<32x1xf32>
    %cst_31 = arith.constant 0.000000e+00 : f32
    %72 = vector.broadcast %cst_31 : f32 to vector<32x1xf32>
    %73 = arith.maximumf %71, %72 : vector<32x1xf32>
    %74 = vector.broadcast %64 : vector<32x1xf32> to vector<32x32xf32>
    %75 = arith.subf %60, %74 : vector<32x32xf32>
    %cst_32 = arith.constant 9.99999974E-6 : f32
    %76 = vector.broadcast %cst_32 : f32 to vector<32x1xf32>
    %77 = arith.addf %73, %76 : vector<32x1xf32>
    %78 = math.rsqrt %77 : vector<32x1xf32>
    %79 = vector.broadcast %78 : vector<32x1xf32> to vector<32x32xf32>
    %80 = arith.mulf %75, %79 : vector<32x32xf32>
    %81 = arith.truncf %80 : vector<32x32xf32> to vector<32x32xbf16>
    %c0_33 = arith.constant 0 : index
    %c0_34 = arith.constant 0 : index
    %82 = vector.load %arg9[%c0_33, %c0_34] : memref<32x64xbf16, #tpu.memory_space<vmem>>, vector<32x64xbf16>
    %cst_35 = arith.constant dense<0.000000e+00> : vector<32x64xf32>
    %83 = tpu.matmul %81, %82, %cst_35 {dimension_numbers = #tpu.dot_dimension_numbers<[1], [0], [0], [1], [0, 0, 1, 1], [], []>} : vector<32x32xbf16>, vector<32x64xbf16>, vector<32x64xf32> -> vector<32x64xf32>
    %c0_36 = arith.constant 0 : index
    %c0_37 = arith.constant 0 : index
    %84 = vector.load %arg10[%c0_36, %c0_37] : memref<1x64xf32, #tpu.memory_space<vmem>>, vector<1x64xf32>
    %85 = vector.broadcast %84 : vector<1x64xf32> to vector<32x64xf32>
    %86 = arith.addf %83, %85 : vector<32x64xf32>
    %87 = arith.mulf %86, %86 : vector<32x64xf32>
    %88 = arith.mulf %86, %87 : vector<32x64xf32>
    %cst_38 = arith.constant 4.471500e-02 : f32
    %89 = vector.broadcast %cst_38 : f32 to vector<32x64xf32>
    %90 = arith.mulf %89, %88 : vector<32x64xf32>
    %91 = arith.addf %86, %90 : vector<32x64xf32>
    %cst_39 = arith.constant 0.797884583 : f32
    %92 = vector.broadcast %cst_39 : f32 to vector<32x64xf32>
    %93 = arith.mulf %92, %91 : vector<32x64xf32>
    %94 = math.tanh %93 : vector<32x64xf32>
    %cst_40 = arith.constant 1.000000e+00 : f32
    %95 = vector.broadcast %cst_40 : f32 to vector<32x64xf32>
    %96 = arith.addf %95, %94 : vector<32x64xf32>
    %cst_41 = arith.constant 5.000000e-01 : f32
    %97 = vector.broadcast %cst_41 : f32 to vector<32x64xf32>
    %98 = arith.mulf %97, %96 : vector<32x64xf32>
    %99 = arith.mulf %86, %98 : vector<32x64xf32>
    %100 = arith.truncf %99 : vector<32x64xf32> to vector<32x64xbf16>
    %c0_42 = arith.constant 0 : index
    %c0_43 = arith.constant 0 : index
    %101 = vector.load %arg11[%c0_42, %c0_43] : memref<64x32xbf16, #tpu.memory_space<vmem>>, vector<64x32xbf16>
    %cst_44 = arith.constant dense<0.000000e+00> : vector<32x32xf32>
    %102 = tpu.matmul %100, %101, %cst_44 {dimension_numbers = #tpu.dot_dimension_numbers<[1], [0], [0], [1], [0, 0, 1, 1], [], []>} : vector<32x64xbf16>, vector<64x32xbf16>, vector<32x32xf32> -> vector<32x32xf32>
    %c0_45 = arith.constant 0 : index
    %c0_46 = arith.constant 0 : index
    %103 = vector.load %arg12[%c0_45, %c0_46] : memref<1x32xf32, #tpu.memory_space<vmem>>, vector<1x32xf32>
    %104 = vector.broadcast %103 : vector<1x32xf32> to vector<32x32xf32>
    %105 = arith.addf %102, %104 : vector<32x32xf32>
    %106 = arith.addf %60, %105 : vector<32x32xf32>
    %107 = arith.truncf %106 : vector<32x32xf32> to vector<32x32xbf16>
    %c0_47 = arith.constant 0 : index
    %c0_48 = arith.constant 0 : index
    %108 = vector.load %arg13[%c0_47, %c0_48] : memref<32x128xbf16, #tpu.memory_space<vmem>>, vector<32x128xbf16>
    %cst_49 = arith.constant dense<0.000000e+00> : vector<32x128xf32>
    %109 = tpu.matmul %107, %108, %cst_49 {dimension_numbers = #tpu.dot_dimension_numbers<[1], [0], [0], [1], [0, 0, 1, 1], [], []>} : vector<32x32xbf16>, vector<32x128xbf16>, vector<32x128xf32> -> vector<32x128xf32>
    %c0_50 = arith.constant 0 : index
    %c0_51 = arith.constant 0 : index
    %110 = vector.load %arg14[%c0_50, %c0_51] : memref<1x128xf32, #tpu.memory_space<vmem>>, vector<1x128xf32>
    %111 = vector.broadcast %110 : vector<1x128xf32> to vector<32x128xf32>
    %112 = arith.addf %109, %111 : vector<32x128xf32>
    %c0_52 = arith.constant 0 : index
    %c0_53 = arith.constant 0 : index
    %113 = vector.load %arg15[%c0_52, %c0_53] : memref<32x128xf32, #tpu.memory_space<vmem>>, vector<32x128xf32>
    tpu.vector_store %arg15[%c0_52, %c0_53], %112 {strides = array<i32>} : memref<32x128xf32, #tpu.memory_space<vmem>>, vector<32x128xf32>,
    return
  }
  func.func @transform_0(%arg0: i32) -> (i32, i32) {
    %c0_i32 = arith.constant 0 : i32
    %c0_i32_0 = arith.constant 0 : i32
    return %arg0, %c0_i32 : i32, i32
  }
  func.func @transform_1(%arg0: i32) -> (i32, i32) {
    %c0_i32 = arith.constant 0 : i32
    %c0_i32_0 = arith.constant 0 : i32
    %c0_i32_1 = arith.constant 0 : i32
    return %c0_i32, %c0_i32_0 : i32, i32
  }
  func.func @transform_2(%arg0: i32) -> (i32, i32) {
    %c0_i32 = arith.constant 0 : i32
    %c0_i32_0 = arith.constant 0 : i32
    %c0_i32_1 = arith.constant 0 : i32
    return %c0_i32, %c0_i32_0 : i32, i32
  }
  func.func @transform_3(%arg0: i32) -> (i32, i32) {
    %c0_i32 = arith.constant 0 : i32
    %c0_i32_0 = arith.constant 0 : i32
    %c0_i32_1 = arith.constant 0 : i32
    return %c0_i32, %c0_i32_0 : i32, i32
  }
  func.func @transform_4(%arg0: i32) -> (i32, i32) {
    %c0_i32 = arith.constant 0 : i32
    %c0_i32_0 = arith.constant 0 : i32
    %c0_i32_1 = arith.constant 0 : i32
    return %c0_i32, %c0_i32_0 : i32, i32
  }
  func.func @transform_5(%arg0: i32) -> (i32, i32) {
    %c0_i32 = arith.constant 0 : i32
    %c0_i32_0 = arith.constant 0 : i32
    %c0_i32_1 = arith.constant 0 : i32
    return %c0_i32, %c0_i32_0 : i32, i32
  }
  func.func @transform_6(%arg0: i32) -> (i32, i32) {
    %c0_i32 = arith.constant 0 : i32
    %c0_i32_0 = arith.constant 0 : i32
    %c0_i32_1 = arith.constant 0 : i32
    return %c0_i32, %c0_i32_0 : i32, i32
  }
  func.func @transform_7(%arg0: i32) -> (i32, i32) {
    %c0_i32 = arith.constant 0 : i32
    %c0_i32_0 = arith.constant 0 : i32
    %c0_i32_1 = arith.constant 0 : i32
    return %c0_i32, %c0_i32_0 : i32, i32
  }
  func.func @transform_8(%arg0: i32) -> (i32, i32) {
    %c0_i32 = arith.constant 0 : i32
    %c0_i32_0 = arith.constant 0 : i32
    %c0_i32_1 = arith.constant 0 : i32
    return %c0_i32, %c0_i32_0 : i32, i32
  }
  func.func @transform_9(%arg0: i32) -> (i32, i32) {
    %c0_i32 = arith.constant 0 : i32
    %c0_i32_0 = arith.constant 0 : i32
    %c0_i32_1 = arith.constant 0 : i32
    return %c0_i32, %c0_i32_0 : i32, i32
  }
  func.func @transform_10(%arg0: i32) -> (i32, i32) {
    %c0_i32 = arith.constant 0 : i32
    %c0_i32_0 = arith.constant 0 : i32
    %c0_i32_1 = arith.constant 0 : i32
    return %c0_i32, %c0_i32_0 : i32, i32
  }
  func.func @transform_11(%arg0: i32) -> (i32, i32) {
    %c0_i32 = arith.constant 0 : i32
    %c0_i32_0 = arith.constant 0 : i32
    %c0_i32_1 = arith.constant 0 : i32
    return %c0_i32, %c0_i32_0 : i32, i32
  }
  func.func @transform_12(%arg0: i32) -> (i32, i32) {
    %c0_i32 = arith.constant 0 : i32
    %c0_i32_0 = arith.constant 0 : i32
    %c0_i32_1 = arith.constant 0 : i32
    return %c0_i32, %c0_i32_0 : i32, i32
  }
  func.func @transform_13(%arg0: i32) -> (i32, i32) {
    %c0_i32 = arith.constant 0 : i32
    %c0_i32_0 = arith.constant 0 : i32
    %c0_i32_1 = arith.constant 0 : i32
    return %c0_i32, %c0_i32_0 : i32, i32
  }
  func.func @transform_14(%arg0: i32) -> (i32, i32) {
    %c0_i32 = arith.constant 0 : i32
    %c0_i32_0 = arith.constant 0 : i32
    return %arg0, %c0_i32 : i32, i32
  }
}

</mosaic_0001>

<bundles_post_ra>
// kernel: _lambda_.1
= control target key start
LH: loop header
LB: loop body
LE: loop exit
PB: predicated region body
PF: predicated region fallthrough
CT: control target
= control target key end

     0   :  { %vm90_vm0 = vcmask 523264   ;;  %vm116_vm1 = vcmask 261120   ;;  %v894_v31 = vmov 32.0   ;;  %s895_s17 = smov 96   ;;  %s896_s25 = smov 64   ;;  %s1217_s2 = inlined_call_operand.vmem [shape: bf16[64,32], index: 2, kind: input, shape index: {}]   ;;  %s1218_s3 = inlined_call_operand.vmem [shape: f32[1,32], index: 3, kind: input, shape index: {}, may-alias: {3,7,11}]   ;;  %s1219_s0 = inlined_call_operand.vmem [shape: f32[32,64], index: 0, kind: input, shape index: {}]   ;;  %s1220_s5 = inlined_call_operand.vmem [shape: f32[1,96], index: 5, kind: input, shape index: {}]   ;;  %s1221_s4 = inlined_call_operand.vmem [shape: bf16[32,96], index: 4, kind: input, shape index: {}]   ;;  %s1222_s1 = inlined_call_operand.vmem [shape: f32[32,32], index: 1, kind: input, shape index: {}]   ;;  %s1223_s6 = inlined_call_operand.vmem [shape: bf16[32,32], index: 6, kind: input, shape index: {}]   ;;  %s1224_s7 = inlined_call_operand.vmem [shape: f32[1,32], index: 7, kind: input, shape index: {}, may-alias: {3,7,11}]   ;;  %s1225_s9 = inlined_call_operand.vmem [shape: f32[1,64], index: 9, kind: input, shape index: {}]   ;;  %s1226_s8 = inlined_call_operand.vmem [shape: bf16[32,64], index: 8, kind: input, shape index: {}]   ;;  %s1227_s11 = inlined_call_operand.vmem [shape: f32[1,32], index: 11, kind: input, shape index: {}, may-alias: {3,7,11}]   ;;  %s1228_s10 = inlined_call_operand.vmem [shape: bf16[64,32], index: 10, kind: input, shape index: {}]   ;;  %s1229_s12 = inlined_call_operand.vmem [shape: bf16[32,128], index: 12, kind: input, shape index: {}]   ;;  %s1230_s13 = inlined_call_operand.vmem [shape: f32[1,128], index: 13, kind: input, shape index: {}]   ;;  %s1231_s14 = inlined_call_operand.vmem [shape: f32[32,128], index: 14, kind: output, shape index: {}]  }
   0x1   :  { %v830_v0 = vld [vmem:[%s1217_s2 + $0x18] sm:$0xff]  ;;  %v829_v1 = vld [vmem:[%s1217_s2 + $0x10] sm:$0xff]  ;;  %v828_v2 = vld [vmem:[%s1217_s2 + $0x8] sm:$0xff]  ;;  %852 = vrcp.f32 %v894_v31 }
   0x2   :  { %101 = vmatpush.bf16.msra.mxu0 %v830_v0  ;;  %v827_v3 = vld [vmem:[%s1217_s2] sm:$0xff]  ;;  %v49_v5 = vld [vmem:[%s1219_s0 + $0x8] sm:$0xff]  ;;  %v50_v7 = vld [vmem:[%s1219_s0 + $0x10] sm:$0xff] }
   0x3   :  { %v48_v4 = vld [vmem:[%s1219_s0] sm:$0xff]  ;;  %v51_v8 = vld [vmem:[%s1219_s0 + $0x18] sm:$0xff]  ;;  %v832_v40 = vld [vmem:[%s1221_s4 + $0x8] sm:$0xff] }
   0x4   :  { %v52_v6 = vpack.c.bf16 %v49_v5, %v48_v4  ;;  %v53_v9 = vpack.c.bf16 %v51_v8, %v50_v7  ;;  %v846_v10 = vld [vmem:[%s1218_s3] ss:$0 sm:$0xff]  ;;  %258 = vmatpush.bf16.msra.mxu1 %v832_v40 }
   0x5   :  { %v831_v45 = vld [vmem:[%s1221_s4] sm:$0xff] }
   0x6   :  { %102 = vmatpush.bf16.msra.mxu0 %v829_v1 }
   0x7   :  { %v853_v32 = vpop.eup %852 }
   0x8   :  { %v130_v33 = vmul.f32 32.0, %v853_v32  ;;  %vm134_vm2 = vweird.f32 %v853_v32  ;;  %259 = vmatpush.bf16.msra.mxu1 %v831_v45 }
   0xa   :  { %103 = vmatpush.bf16.msra.mxu0 %v828_v2  ;;  %v131_v34 = vsub.f32 1.0, %v130_v33 }
   0xc   :  { %v132_v35 = vmul.f32 %v853_v32, %v131_v34 }
   0xe   :  { %104 = vmatpush.bf16.msra.mxu0 %v827_v3  ;;  %v133_v36 = vadd.f32 %v853_v32, %v132_v35 }
  0x10   :  { %v1029_v37 = vsel %vm134_vm2, %v853_v32, %v133_v36 }
  0x11   :  { %763 = vmatmul.msk.bf16.vlgmr.msra.gmra.mxu0 %vm90_vm0, %v52_v6 }
  0x21   :  { %764 = vmatmul.msk.bf16.gmra.mxu0 %vm90_vm0, %v53_v9 }
  0x8e   :  { %v106_v11 = vpop.f32.mrf.mxu0 }
  0x8f   :  { %v1001_v12 = vadd.f32 %v846_v10, %v106_v11 }
  0x91   :  { %v117_v13 = vsel %vm116_vm1, %v1001_v12, 0.0  ;;  %v140_v14 = vmul.f32 %v1001_v12, %v1001_v12 }
  0x92   :  { %118 = vadd.xlane.f32.xlu0 %v117_v13 }
  0x93   :  { %v144_v15 = vsel %vm116_vm1, %v140_v14, 0.0 }
  0x94   :  { %145 = vadd.xlane.f32.xlu1 %v144_v15 }
  0x96   :  { %v108_v16 = vpop.f32.mrf.mxu0 }
  0x97   :  { %v1008_v17 = vadd.f32 %v846_v10, %v108_v16 }
  0x99   :  { %v120_v18 = vsel %vm116_vm1, %v1008_v17, 0.0  ;;  %v141_v19 = vmul.f32 %v1008_v17, %v1008_v17 }
  0x9a   :  { %121 = vadd.xlane.f32.xlu0 %v120_v18 }
  0x9b   :  { %v147_v20 = vsel %vm116_vm1, %v141_v19, 0.0 }
  0x9c   :  { %148 = vadd.xlane.f32.xlu1 %v147_v20 }
  0x9e   :  { %v111_v21 = vpop.f32.mrf.mxu0 }
  0x9f   :  { %v1015_v22 = vadd.f32 %v846_v10, %v111_v21 }
  0xa1   :  { %v123_v23 = vsel %vm116_vm1, %v1015_v22, 0.0  ;;  %v142_v24 = vmul.f32 %v1015_v22, %v1015_v22 }
  0xa2   :  { %124 = vadd.xlane.f32.xlu2 %v123_v23 }
  0xa3   :  { %v150_v25 = vsel %vm116_vm1, %v142_v24, 0.0 }
  0xa4   :  { %151 = vadd.xlane.f32.xlu0 %v150_v25 }
  0xa6   :  { %v113_v26 = vpop.f32.mrf.mxu0 }
  0xa7   :  { %v1022_v27 = vadd.f32 %v846_v10, %v113_v26 }
  0xa9   :  { %v126_v28 = vsel %vm116_vm1, %v1022_v27, 0.0  ;;  %v143_v29 = vmul.f32 %v1022_v27, %v1022_v27 }
  0xaa   :  { %127 = vadd.xlane.f32.xlu2 %v126_v28 }
  0xab   :  { %v153_v30 = vsel %vm116_vm1, %v143_v29, 0.0 }
  0xac   :  { %154 = vadd.xlane.f32.xlu1 %v153_v30 }
 0x105   :  { %v119_v38 = vpop.xlane.xlu0 %118 }
 0x106   :  { %v1032_v39 = vmul.f32 %v1029_v37, %v119_v38 }
 0x107   :  { %v146_v41 = vpop.xlane.xlu1 %145 }
 0x108   :  { %v160_v42 = vmul.f32 %v1032_v39, %v1032_v39  ;;  %v156_v43 = vmul.f32 %v146_v41, %v1029_v37  ;;  %v172_v26 = vsub.f32 %v1001_v12, %v1032_v39 }
 0x10a   :  { %v164_v44 = vsub.f32 %v156_v43, %v160_v42 }
 0x10c   :  { %v168_v46 = vmax.f32 %v164_v44, 0.0 }
 0x10d   :  { %v122_v47 = vpop.xlane.xlu0 %121 }
 0x10e   :  { %v176_v48 = vadd.f32 1e-05, %v168_v46  ;;  %v137_v49 = vmul.f32 %v1029_v37, %v122_v47 }
 0x10f   :  { %v149_v50 = vpop.xlane.xlu1 %148 }
 0x110   :  { %854 = vrsqrt.f32 %v176_v48  ;;  %v161_v51 = vmul.f32 %v137_v49, %v137_v49  ;;  %v157_v52 = vmul.f32 %v149_v50, %v1029_v37  ;;  %vm186_vm4 = vweird.f32 %v176_v48 }
 0x111   :  { %v173_v28 = vsub.f32 %v1008_v17, %v137_v49 }
 0x112   :  { %v165_v53 = vsub.f32 %v157_v52, %v161_v51  ;;  %v847_v52 = vld [vmem:[%s1220_s5] ss:$0 sm:$0xff] }
 0x114   :  { %v169_v54 = vmax.f32 %v165_v53, 0.0 }
 0x115   :  { %v125_v55 = vpop.xlane.xlu2 %124 }
 0x116   :  { %v855_v56 = vpop.eup %854  ;;  %v1046_v57 = vmul.f32 %v1029_v37, %v125_v55  ;;  %v177_v59 = vadd.f32 1e-05, %v169_v54 }
 0x117   :  { %v181_v58 = vmul.f32 %v855_v56, %v176_v48  ;;  %v152_v60 = vpop.xlane.xlu0 %151  ;;  %vm187_vm3 = vweird.f32 %v855_v56 }
 0x118   :  { %v162_v61 = vmul.f32 %v1046_v57, %v1046_v57  ;;  %v158_v62 = vmul.f32 %v152_v60, %v1029_v37  ;;  %856 = vrsqrt.f32 %v177_v59  ;;  %vm188_vm6 = vmor %vm186_vm4, %vm187_vm3  ;;  %vm196_vm7 = vweird.f32 %v177_v59 }
 0x119   :  { %v182_v63 = vmul.f32 %v855_v56, %v181_v58  ;;  %v174_v45 = vsub.f32 %v1015_v22, %v1046_v57 }
 0x11a   :  { %v166_v0 = vsub.f32 %v158_v62, %v162_v61 }
 0x11b   :  { %v183_v1 = vmul.f32 0.5, %v182_v63 }
 0x11c   :  { %v170_v2 = vmax.f32 %v166_v0, 0.0 }
 0x11d   :  { %v128_v3 = vpop.xlane.xlu2 %127  ;;  %v184_v8 = vsub.f32 1.5, %v183_v1 }
 0x11e   :  { %v178_v4 = vadd.f32 1e-05, %v170_v2  ;;  %v139_v5 = vmul.f32 %v1029_v37, %v128_v3  ;;  %v857_v6 = vpop.eup %856  ;;  %v273_v2 = vld [vmem:[%s1222_s1] sm:$0xff] }
 0x11f   :  { %v155_v7 = vpop.xlane.xlu1 %154  ;;  %v191_v9 = vmul.f32 %v857_v6, %v177_v59  ;;  %v185_v16 = vmul.f32 %v855_v56, %v184_v8  ;;  %vm197_vm5 = vweird.f32 %v857_v6 }
 0x120   :  { %858 = vrsqrt.f32 %v178_v4  ;;  %v163_v10 = vmul.f32 %v139_v5, %v139_v5  ;;  %v159_v11 = vmul.f32 %v155_v7, %v1029_v37  ;;  %vm198_vm8 = vmor %vm196_vm7, %vm197_vm5  ;;  %vm206_vm10 = vweird.f32 %v178_v4 }
 0x121   :  { %v192_v13 = vmul.f32 %v857_v6, %v191_v9  ;;  %v189_v24 = vsel %vm188_vm6, %v855_v56, %v185_v16  ;;  %v175_v46 = vsub.f32 %v1022_v27, %v139_v5 }
 0x122   :  { %v167_v14 = vsub.f32 %v159_v11, %v163_v10  ;;  %v220_v31 = vmul.f32 %v189_v24, %v172_v26  ;;  %v275_v10 = vld [vmem:[%s1222_s1 + $0x10] sm:$0xff] }
 0x123   :  { %v193_v15 = vmul.f32 0.5, %v192_v13 }
 0x124   :  { %v171_v18 = vmax.f32 %v167_v14, 0.0 }
 0x125   :  { %v194_v20 = vsub.f32 1.5, %v193_v15  ;;  %v276_v15 = vld [vmem:[%s1222_s1 + $0x18] sm:$0xff] }
 0x126   :  { %v859_v19 = vpop.eup %858  ;;  %v179_v23 = vadd.f32 1e-05, %v171_v18 }
 0x127   :  { %v201_v21 = vmul.f32 %v859_v19, %v178_v4  ;;  %v195_v25 = vmul.f32 %v857_v6, %v194_v20  ;;  %vm207_vm9 = vweird.f32 %v859_v19 }
 0x128   :  { %860 = vrsqrt.f32 %v179_v23  ;;  %vm208_vm12 = vmor %vm206_vm10, %vm207_vm9  ;;  %vm216_vm13 = vweird.f32 %v179_v23 }
 0x129   :  { %v202_v29 = vmul.f32 %v859_v19, %v201_v21  ;;  %v199_v30 = vsel %vm198_vm8, %v857_v6, %v195_v25  ;;  %v274_v6 = vld [vmem:[%s1222_s1 + $0x8] sm:$0xff] }
 0x12a   :  { %v221_v32 = vmul.f32 %v199_v30, %v173_v28 }
 0x12b   :  { %v203_v33 = vmul.f32 0.5, %v202_v29 }
 0x12c   :  { %v224_v34 = vpack.c.bf16 %v221_v32, %v220_v31 }
 0x12d   :  { %v204_v36 = vsub.f32 1.5, %v203_v33 }
 0x12e   :  { %v861_v35 = vpop.eup %860  ;;  %773 = vmatmul.msk.bf16.vlgmr.msra.gmra.mxu1 %vm116_vm1, %v224_v34 }
 0x12f   :  { %v211_v38 = vmul.f32 %v861_v35, %v179_v23  ;;  %v205_v42 = vmul.f32 %v859_v19, %v204_v36  ;;  %vm217_vm11 = vweird.f32 %v861_v35 }
 0x130   :  { %vm218_vm14 = vmor %vm216_vm13, %vm217_vm11 }
 0x131   :  { %v212_v40 = vmul.f32 %v861_v35, %v211_v38  ;;  %v209_v43 = vsel %vm208_vm12, %v859_v19, %v205_v42 }
 0x132   :  { %v222_v48 = vmul.f32 %v209_v43, %v174_v45 }
 0x133   :  { %v213_v41 = vmul.f32 0.5, %v212_v40 }
 0x135   :  { %v214_v39 = vsub.f32 1.5, %v213_v41 }
 0x137   :  { %v215_v44 = vmul.f32 %v861_v35, %v214_v39 }
 0x139   :  { %v219_v47 = vsel %vm218_vm14, %v861_v35, %v215_v44 }
 0x13a   :  { %v223_v49 = vmul.f32 %v219_v47, %v175_v46  ;;  %v834_v46 = vld [vmem:[%s1223_s6 + $0x8] sm:$0xff]  ;;  %v833_v47 = vld [vmem:[%s1223_s6] sm:$0xff] }
 0x13b   :  { %425 = vmatpush.bf16.msrb.mxu1 %v834_v46 }
 0x13c   :  { %v225_v50 = vpack.c.bf16 %v223_v49, %v222_v48 }
 0x13e   :  { %774 = vmatmul.msk.bf16.gmra.mxu1 %vm116_vm1, %v225_v50 }
 0x13f   :  { %426 = vmatpush.bf16.msrb.mxu1 %v833_v47 }
 0x1ab   :  { %v261_v51 = vpop.f32.mrf.mxu1 }
 0x1ac   :  { %v262_v54 = vadd.f32 %v847_v52, %v261_v51 }
 0x1b3   :  { %v263_v53 = vpop.f32.mrf.mxu1 }
 0x1b4   :  { %v264_v55 = vadd.f32 %v847_v52, %v263_v53 }
 0x1b6   :  { %v1064_v56 = vpack.c.bf16 %v264_v55, %v262_v54 }
 0x1b8   :  { %279 = vrot.lane.b32.xlu0 %v1064_v56, %s895_s17 }
 0x1bb   :  { %v266_v57 = vpop.f32.mrf.mxu1 }
 0x1bc   :  { %v267_v59 = vadd.f32 %v847_v52, %v266_v57 }
 0x1c3   :  { %v268_v58 = vpop.f32.mrf.mxu1 }
 0x1c4   :  { %v269_v60 = vadd.f32 %v847_v52, %v268_v58 }
 0x1c6   :  { %v272_v61 = vpack.c.bf16 %v269_v60, %v267_v59 }
 0x1c8   :  { %281 = vrot.lane.b32.xlu2 %v272_v61, %s895_s17 }
 0x222   :  { %v282_v62 = vpop.permute.xlu2 %281 }
 0x223   :  { %v293_v63 = vsel %vm116_vm1, %v282_v62, 0 }
 0x224   :  { %301 = vmatpush.bf16.xpose.msra.mxu2 %v293_v63 }
 0x22a   :  { %v280_v0 = vpop.permute.xlu0 %279 }
 0x22b   :  { %v290_v1 = vsel %vm116_vm1, %v280_v0, 0 }
 0x22c   :  { %302 = vmatpush.bf16.xpose.msra.mxu2 %v290_v1 }
 0x233   :  { %775 = vmatmul.msk.bf16.vlgmr.msra.gmra.mxu2 %vm116_vm1, %v1064_v56 }
 0x243   :  { %776 = vmatmul.msk.bf16.gmra.mxu2 %vm116_vm1, %v272_v61 }
 0x2b6   :  { %v304_v3 = vpop.f32.mrf.mxu2 }
 0x2b7   :  { %v305_v4 = vadd.f32 %v304_v3, %v273_v2  ;;  %v848_v3 = vld [vmem:[%s1224_s7] ss:$0 sm:$0xff] }
 0x2b9   :  { %v314_v5 = vsel %vm116_vm1, %v305_v4, -inf }
 0x2ba   :  { %315 = vmax.xlane.f32.xlu1 %v314_v5 }
 0x2be   :  { %v306_v7 = vpop.f32.mrf.mxu2 }
 0x2bf   :  { %v307_v8 = vadd.f32 %v306_v7, %v274_v6 }
 0x2c1   :  { %v317_v9 = vsel %vm116_vm1, %v307_v8, -inf }
 0x2c2   :  { %318 = vmax.xlane.f32.xlu1 %v317_v9 }
 0x2c6   :  { %v309_v11 = vpop.f32.mrf.mxu2 }
 0x2c7   :  { %v310_v13 = vadd.f32 %v309_v11, %v275_v10 }
 0x2c9   :  { %v320_v14 = vsel %vm116_vm1, %v310_v13, -inf }
 0x2ca   :  { %321 = vmax.xlane.f32.xlu1 %v320_v14 }
 0x2ce   :  { %v311_v16 = vpop.f32.mrf.mxu2 }
 0x2cf   :  { %v312_v18 = vadd.f32 %v311_v16, %v276_v15 }
 0x2d1   :  { %v323_v19 = vsel %vm116_vm1, %v312_v18, -inf }
 0x2d2   :  { %324 = vmax.xlane.f32.xlu2 %v323_v19 }
 0x2e3   :  { %362 = vrot.lane.b32.xlu1 %v272_v61, %s896_s25 }
 0x32d   :  { %v316_v20 = vpop.xlane.xlu1 %315 }
 0x32e   :  { %v326_v21 = vsub.f32 %v305_v4, %v316_v20 }
 0x330   :  { %v330_v23 = vmul.f32 1.442695, %v326_v21 }
 0x332   :  { %862 = vpow2.f32 %v330_v23 }
 0x335   :  { %v319_v24 = vpop.xlane.xlu1 %318 }
 0x336   :  { %v327_v25 = vsub.f32 %v307_v8, %v319_v24 }
 0x338   :  { %v863_v26 = vpop.eup %862  ;;  %v332_v28 = vmul.f32 1.442695, %v327_v25 }
 0x339   :  { %v338_v29 = vsel %vm116_vm1, %v863_v26, 0.0 }
 0x33a   :  { %864 = vpow2.f32 %v332_v28  ;;  %339 = vadd.xlane.f32.xlu0 %v338_v29  ;;  %v836_v29 = vld [vmem:[%s1226_s8 + $0x8] sm:$0xff] }
 0x33d   :  { %v322_v30 = vpop.xlane.xlu1 %321 }
 0x33e   :  { %v328_v31 = vsub.f32 %v310_v13, %v322_v30 }
 0x340   :  { %v865_v32 = vpop.eup %864  ;;  %v334_v33 = vmul.f32 1.442695, %v328_v31 }
 0x341   :  { %v341_v34 = vsel %vm116_vm1, %v865_v32, 0.0 }
 0x342   :  { %866 = vpow2.f32 %v334_v33  ;;  %342 = vadd.xlane.f32.xlu1 %v341_v34 }
 0x345   :  { %v325_v35 = vpop.xlane.xlu2 %324 }
 0x346   :  { %v329_v36 = vsub.f32 %v312_v18, %v325_v35 }
 0x348   :  { %v867_v38 = vpop.eup %866  ;;  %v336_v40 = vmul.f32 1.442695, %v329_v36 }
 0x349   :  { %v344_v41 = vsel %vm116_vm1, %v867_v38, 0.0 }
 0x34a   :  { %868 = vpow2.f32 %v336_v40  ;;  %345 = vadd.xlane.f32.xlu2 %v344_v41  ;;  %v835_v40 = vld [vmem:[%s1226_s8] sm:$0xff] }
 0x350   :  { %v869_v42 = vpop.eup %868 }
 0x351   :  { %v347_v39 = vsel %vm116_vm1, %v869_v42, 0.0 }
 0x352   :  { %348 = vadd.xlane.f32.xlu0 %v347_v39 }
 0x355   :  { %v363_v43 = vpop.permute.xlu1 %362 }
 0x356   :  { %378 = vmatpush.bf16.msra.mxu3 %v363_v43 }
 0x35b   :  { %360 = vrot.lane.b32.xlu1 %v1064_v56, %s896_s25 }
 0x3ad   :  { %v340_v45 = vpop.xlane.xlu0 %339 }
 0x3b5   :  { %v343_v44 = vpop.xlane.xlu1 %342 }
 0x3b6   :  { %870 = vrcp.f32 %v343_v44 }
 0x3b7   :  { %872 = vrcp.f32 %v340_v45 }
 0x3bc   :  { %v871_v48 = vpop.eup %870 }
 0x3bd   :  { %v873_v49 = vpop.eup %872  ;;  %v355_v50 = vmul.f32 %v871_v48, %v865_v32  ;;  %v346_v55 = vpop.xlane.xlu2 %345 }
 0x3be   :  { %v354_v52 = vmul.f32 %v873_v49, %v863_v26 }
 0x3c0   :  { %v358_v54 = vpack.c.bf16 %v355_v50, %v354_v52 }
 0x3c5   :  { %v349_v53 = vpop.xlane.xlu0 %348 }
 0x3c6   :  { %874 = vrcp.f32 %v349_v53 }
 0x3c7   :  { %876 = vrcp.f32 %v346_v55 }
 0x3cc   :  { %v875_v56 = vpop.eup %874 }
 0x3cd   :  { %v361_v51 = vpop.permute.xlu1 %360  ;;  %v877_v57 = vpop.eup %876  ;;  %v357_v58 = vmul.f32 %v875_v56, %v869_v42 }
 0x3ce   :  { %379 = vmatpush.bf16.msra.mxu3 %v361_v51  ;;  %v356_v59 = vmul.f32 %v877_v57, %v867_v38 }
 0x3d0   :  { %v359_v60 = vpack.c.bf16 %v357_v58, %v356_v59 }
 0x3d1   :  { %777 = vmatmul.msk.bf16.vlgmr.msra.gmra.mxu3 %vm116_vm1, %v358_v54 }
 0x3d2   :  { %576 = vmatpush.bf16.msrb.mxu3 %v836_v29 }
 0x3d6   :  { %577 = vmatpush.bf16.msrb.mxu3 %v835_v40 }
 0x3e1   :  { %778 = vmatmul.msk.bf16.gmra.mxu3 %vm116_vm1, %v359_v60 }
 0x454   :  { %v381_v61 = vpop.f32.mrf.mxu3 }
 0x45c   :  { %v383_v62 = vpop.f32.mrf.mxu3 }
 0x45d   :  { %v391_v63 = vpack.c.bf16 %v383_v62, %v381_v61 }
 0x45f   :  { %787 = vmatmul.msk.bf16.vlgmr.msrb.gmra.mxu1 %vm116_vm1, %v391_v63 }
 0x464   :  { %v386_v0 = vpop.f32.mrf.mxu3 }
 0x46c   :  { %v388_v1 = vpop.f32.mrf.mxu3 }
 0x46d   :  { %v392_v2 = vpack.c.bf16 %v388_v1, %v386_v0 }
 0x46f   :  { %788 = vmatmul.msk.bf16.gmra.mxu1 %vm116_vm1, %v392_v2 }
 0x4dc   :  { %v428_v4 = vpop.f32.mrf.mxu1 }
 0x4dd   :  { %v429_v5 = vadd.f32 %v848_v3, %v428_v4 }
 0x4df   :  { %v1109_v6 = vadd.f32 %v429_v5, %v1001_v12 }
 0x4e1   :  { %v442_v7 = vsel %vm116_vm1, %v1109_v6, 0.0  ;;  %v458_v8 = vmul.f32 %v1109_v6, %v1109_v6 }
 0x4e2   :  { %443 = vadd.xlane.f32.xlu1 %v442_v7 }
 0x4e3   :  { %v462_v9 = vsel %vm116_vm1, %v458_v8, 0.0 }
 0x4e4   :  { %v430_v10 = vpop.f32.mrf.mxu1  ;;  %463 = vadd.xlane.f32.xlu0 %v462_v9 }
 0x4e5   :  { %v431_v11 = vadd.f32 %v848_v3, %v430_v10 }
 0x4e7   :  { %v1117_v13 = vadd.f32 %v431_v11, %v1008_v17 }
 0x4e9   :  { %v445_v14 = vsel %vm116_vm1, %v1117_v13, 0.0  ;;  %v459_v16 = vmul.f32 %v1117_v13, %v1117_v13 }
 0x4ea   :  { %446 = vadd.xlane.f32.xlu2 %v445_v14 }
 0x4eb   :  { %v465_v19 = vsel %vm116_vm1, %v459_v16, 0.0 }
 0x4ec   :  { %v433_v12 = vpop.f32.mrf.mxu1 }
 0x4ed   :  { %v434_v15 = vadd.f32 %v848_v3, %v433_v12 }
 0x4ef   :  { %v1124_v18 = vadd.f32 %v434_v15, %v1015_v22 }
 0x4f1   :  { %v448_v20 = vsel %vm116_vm1, %v1124_v18, 0.0  ;;  %v460_v23 = vmul.f32 %v1124_v18, %v1124_v18 }
 0x4f2   :  { %466 = vadd.xlane.f32.xlu2 %v465_v19  ;;  %449 = vadd.xlane.f32.xlu0 %v448_v20 }
 0x4f3   :  { %v468_v22 = vsel %vm116_vm1, %v460_v23, 0.0 }
 0x4f4   :  { %v435_v17 = vpop.f32.mrf.mxu1 }
 0x4f5   :  { %v436_v21 = vadd.f32 %v848_v3, %v435_v17 }
 0x4f7   :  { %v1132_v24 = vadd.f32 %v436_v21, %v1022_v27 }
 0x4f9   :  { %v451_v25 = vsel %vm116_vm1, %v1132_v24, 0.0  ;;  %v461_v26 = vmul.f32 %v1132_v24, %v1132_v24 }
 0x4fa   :  { %452 = vadd.xlane.f32.xlu2 %v451_v25  ;;  %469 = vadd.xlane.f32.xlu0 %v468_v22 }
 0x4fb   :  { %v471_v28 = vsel %vm116_vm1, %v461_v26, 0.0 }
 0x502   :  { %472 = vadd.xlane.f32.xlu2 %v471_v28 }
 0x555   :  { %v444_v27 = vpop.xlane.xlu1 %443 }
 0x556   :  { %v1144_v30 = vmul.f32 %v444_v27, %v1029_v37 }
 0x557   :  { %v464_v31 = vpop.xlane.xlu0 %463 }
 0x558   :  { %v478_v32 = vmul.f32 %v1144_v30, %v1144_v30  ;;  %v474_v33 = vmul.f32 %v464_v31, %v1029_v37  ;;  %v490_v16 = vsub.f32 %v1109_v6, %v1144_v30 }
 0x55a   :  { %v482_v34 = vsub.f32 %v474_v33, %v478_v32 }
 0x55c   :  { %v486_v35 = vmax.f32 %v482_v34, 0.0 }
 0x55d   :  { %v447_v36 = vpop.xlane.xlu2 %446 }
 0x55e   :  { %v494_v38 = vadd.f32 1e-05, %v486_v35  ;;  %v455_v41 = vmul.f32 %v447_v36, %v1029_v37 }
 0x560   :  { %878 = vrsqrt.f32 %v494_v38  ;;  %v479_v44 = vmul.f32 %v455_v41, %v455_v41  ;;  %vm504_vm2 = vweird.f32 %v494_v38 }
 0x565   :  { %v467_v42 = vpop.xlane.xlu2 %466  ;;  %v450_v39 = vpop.xlane.xlu0 %449 }
 0x566   :  { %v879_v43 = vpop.eup %878  ;;  %v475_v45 = vmul.f32 %v467_v42, %v1029_v37  ;;  %v1155_v49 = vmul.f32 %v450_v39, %v1029_v37  ;;  %v840_v42 = vld [vmem:[%s1228_s10 + $0x18] sm:$0xff]  ;;  %v839_v39 = vld [vmem:[%s1228_s10 + $0x10] sm:$0xff] }
 0x567   :  { %v499_v47 = vmul.f32 %v879_v43, %v494_v38  ;;  %vm505_vm15 = vweird.f32 %v879_v43  ;;  %673 = vmatpush.bf16.msrb.mxu0 %v840_v42 }
 0x568   :  { %v483_v46 = vsub.f32 %v475_v45, %v479_v44  ;;  %v480_v54 = vmul.f32 %v1155_v49, %v1155_v49  ;;  %vm506_vm4 = vmor %vm504_vm2, %vm505_vm15  ;;  %v492_v34 = vsub.f32 %v1124_v18, %v1155_v49  ;;  %v849_v44 = vld [vmem:[%s1225_s9] ss:$0 sm:$0xff] }
 0x569   :  { %v500_v51 = vmul.f32 %v879_v43, %v499_v47  ;;  %v837_v45 = vld [vmem:[%s1228_s10] sm:$0xff] }
 0x56a   :  { %v487_v48 = vmax.f32 %v483_v46, 0.0 }
 0x56b   :  { %v501_v57 = vmul.f32 0.5, %v500_v51  ;;  %674 = vmatpush.bf16.msrb.mxu0 %v839_v39 }
 0x56c   :  { %v495_v50 = vadd.f32 1e-05, %v487_v48 }
 0x56d   :  { %v453_v52 = vpop.xlane.xlu2 %452  ;;  %v470_v53 = vpop.xlane.xlu0 %469  ;;  %v502_v62 = vsub.f32 1.5, %v501_v57 }
 0x56e   :  { %880 = vrsqrt.f32 %v495_v50  ;;  %v476_v55 = vmul.f32 %v470_v53, %v1029_v37  ;;  %v457_v58 = vmul.f32 %v453_v52, %v1029_v37  ;;  %vm514_vm5 = vweird.f32 %v495_v50 }
 0x56f   :  { %v503_v5 = vmul.f32 %v879_v43, %v502_v62 }
 0x570   :  { %v484_v56 = vsub.f32 %v476_v55, %v480_v54  ;;  %v481_v1 = vmul.f32 %v457_v58, %v457_v58  ;;  %v493_v35 = vsub.f32 %v1132_v24, %v457_v58 }
 0x571   :  { %v507_v15 = vsel %vm506_vm4, %v879_v43, %v503_v5  ;;  %v838_v43 = vld [vmem:[%s1228_s10 + $0x8] sm:$0xff] }
 0x572   :  { %v488_v59 = vmax.f32 %v484_v56, 0.0  ;;  %v538_v17 = vmul.f32 %v507_v15, %v490_v16  ;;  %675 = vmatpush.bf16.msrb.mxu0 %v838_v43 }
 0x574   :  { %v881_v60 = vpop.eup %880  ;;  %v496_v61 = vadd.f32 1e-05, %v488_v59 }
 0x575   :  { %v509_v63 = vmul.f32 %v881_v60, %v495_v50  ;;  %v473_v0 = vpop.xlane.xlu2 %472  ;;  %vm515_vm3 = vweird.f32 %v881_v60 }
 0x576   :  { %882 = vrsqrt.f32 %v496_v61  ;;  %v477_v2 = vmul.f32 %v473_v0, %v1029_v37  ;;  %v491_v37 = vsub.f32 %v1117_v13, %v455_v41  ;;  %vm516_vm6 = vmor %vm514_vm5, %vm515_vm3  ;;  %vm524_vm8 = vweird.f32 %v496_v61  ;;  %676 = vmatpush.bf16.msrb.mxu0 %v837_v45 }
 0x577   :  { %v510_v3 = vmul.f32 %v881_v60, %v509_v63  ;;  %v842_v63 = vld [vmem:[%s1229_s12 + $0x8] sm:$0xff] }
 0x578   :  { %v485_v4 = vsub.f32 %v477_v2, %v481_v1  ;;  %726 = vmatpush.bf16.msrb.mxu2 %v842_v63  ;;  %v841_v2 = vld [vmem:[%s1229_s12] sm:$0xff] }
 0x579   :  { %v511_v7 = vmul.f32 0.5, %v510_v3 }
 0x57a   :  { %v489_v8 = vmax.f32 %v485_v4, 0.0 }
 0x57b   :  { %v512_v9 = vsub.f32 1.5, %v511_v7 }
 0x57c   :  { %v883_v10 = vpop.eup %882  ;;  %v497_v11 = vadd.f32 1e-05, %v489_v8  ;;  %727 = vmatpush.bf16.msrb.mxu2 %v841_v2 }
 0x57d   :  { %v513_v14 = vmul.f32 %v881_v60, %v512_v9  ;;  %v519_v12 = vmul.f32 %v883_v10, %v496_v61  ;;  %vm525_vm7 = vweird.f32 %v883_v10 }
 0x57e   :  { %884 = vrsqrt.f32 %v497_v11  ;;  %vm526_vm10 = vmor %vm524_vm8, %vm525_vm7  ;;  %vm534_vm11 = vweird.f32 %v497_v11 }
 0x57f   :  { %v520_v19 = vmul.f32 %v883_v10, %v519_v12  ;;  %v517_v20 = vsel %vm516_vm6, %v881_v60, %v513_v14 }
 0x580   :  { %v539_v21 = vmul.f32 %v517_v20, %v491_v37 }
 0x581   :  { %v521_v23 = vmul.f32 0.5, %v520_v19 }
 0x582   :  { %v542_v25 = vpack.c.bf16 %v539_v21, %v538_v17 }
 0x583   :  { %v522_v26 = vsub.f32 1.5, %v521_v23 }
 0x584   :  { %v885_v22 = vpop.eup %884  ;;  %797 = vmatmul.msk.bf16.vlgmr.msrb.gmra.mxu3 %vm116_vm1, %v542_v25 }
 0x585   :  { %v529_v28 = vmul.f32 %v885_v22, %v497_v11  ;;  %v523_v31 = vmul.f32 %v883_v10, %v522_v26  ;;  %vm535_vm9 = vweird.f32 %v885_v22 }
 0x586   :  { %vm536_vm12 = vmor %vm534_vm11, %vm535_vm9 }
 0x587   :  { %v530_v29 = vmul.f32 %v885_v22, %v529_v28  ;;  %v527_v32 = vsel %vm526_vm10, %v883_v10, %v523_v31 }
 0x588   :  { %v540_v38 = vmul.f32 %v527_v32, %v492_v34  ;;  %v850_v34 = vld [vmem:[%s1227_s11] ss:$0 sm:$0xff] }
 0x589   :  { %v531_v27 = vmul.f32 0.5, %v530_v29 }
 0x58b   :  { %v532_v30 = vsub.f32 1.5, %v531_v27 }
 0x58d   :  { %v533_v33 = vmul.f32 %v885_v22, %v532_v30 }
 0x58f   :  { %v537_v36 = vsel %vm536_vm12, %v885_v22, %v533_v33 }
 0x590   :  { %v541_v40 = vmul.f32 %v537_v36, %v493_v35 }
 0x592   :  { %v543_v41 = vpack.c.bf16 %v541_v40, %v540_v38 }
 0x594   :  { %798 = vmatmul.msk.bf16.gmra.mxu3 %vm116_vm1, %v543_v41 }
 0x607   :  { %v579_v46 = vpop.f32.mrf.mxu3 }
 0x608   :  { %v580_v47 = vadd.f32 %v849_v44, %v579_v46 }
 0x60a   :  { %v589_v48 = vmul.f32 %v580_v47, %v580_v47 }
 0x60c   :  { %v593_v49 = vmul.f32 %v589_v48, %v580_v47 }
 0x60e   :  { %v597_v50 = vmul.f32 0.044715, %v593_v49 }
 0x60f   :  { %v581_v51 = vpop.f32.mrf.mxu3 }
 0x610   :  { %v601_v52 = vadd.f32 %v597_v50, %v580_v47  ;;  %v582_v53 = vadd.f32 %v849_v44, %v581_v51 }
 0x612   :  { %v605_v54 = vmul.f32 0.7978846, %v601_v52  ;;  %v590_v55 = vmul.f32 %v582_v53, %v582_v53 }
 0x614   :  { %v594_v56 = vmul.f32 %v590_v55, %v582_v53  ;;  %886 = vtanh.f32 %v605_v54 }
 0x616   :  { %v598_v57 = vmul.f32 0.044715, %v594_v56 }
 0x617   :  { %v584_v58 = vpop.f32.mrf.mxu3 }
 0x618   :  { %v602_v59 = vadd.f32 %v598_v57, %v582_v53  ;;  %v585_v60 = vadd.f32 %v849_v44, %v584_v58 }
 0x61a   :  { %v606_v61 = vmul.f32 0.7978846, %v602_v59  ;;  %v591_v62 = vmul.f32 %v585_v60, %v585_v60  ;;  %v887_v0 = vpop.eup %886 }
 0x61b   :  { %v613_v4 = vadd.f32 1.0, %v887_v0 }
 0x61c   :  { %888 = vtanh.f32 %v606_v61  ;;  %v595_v1 = vmul.f32 %v591_v62, %v585_v60 }
 0x61d   :  { %v617_v14 = vmul.f32 0.5, %v613_v4 }
 0x61e   :  { %v599_v3 = vmul.f32 0.044715, %v595_v1 }
 0x61f   :  { %v586_v5 = vpop.f32.mrf.mxu3  ;;  %v621_v19 = vmul.f32 %v617_v14, %v580_v47 }
 0x620   :  { %v603_v7 = vadd.f32 %v599_v3, %v585_v60  ;;  %v587_v8 = vadd.f32 %v849_v44, %v586_v5 }
 0x622   :  { %v889_v9 = vpop.eup %888  ;;  %v607_v10 = vmul.f32 0.7978846, %v603_v7  ;;  %v592_v11 = vmul.f32 %v587_v8, %v587_v8 }
 0x623   :  { %v614_v12 = vadd.f32 1.0, %v889_v9 }
 0x624   :  { %v596_v15 = vmul.f32 %v592_v11, %v587_v8  ;;  %890 = vtanh.f32 %v607_v10 }
 0x625   :  { %v618_v16 = vmul.f32 0.5, %v614_v12 }
 0x626   :  { %v600_v37 = vmul.f32 0.044715, %v596_v15 }
 0x627   :  { %v622_v20 = vmul.f32 %v618_v16, %v582_v53 }
 0x628   :  { %v604_v17 = vadd.f32 %v600_v37, %v587_v8 }
 0x629   :  { %v625_v21 = vpack.c.bf16 %v622_v20, %v621_v19 }
 0x62a   :  { %v608_v23 = vmul.f32 0.7978846, %v604_v17  ;;  %v891_v25 = vpop.eup %890 }
 0x62b   :  { %815 = vmatmul.msk.bf16.vlgmr.msrb.gmra.mxu0 %vm90_vm0, %v625_v21  ;;  %v615_v22 = vadd.f32 1.0, %v891_v25 }
 0x62c   :  { %892 = vtanh.f32 %v608_v23 }
 0x62d   :  { %v619_v29 = vmul.f32 0.5, %v615_v22 }
 0x62f   :  { %v623_v31 = vmul.f32 %v619_v29, %v585_v60 }
 0x632   :  { %v893_v26 = vpop.eup %892 }
 0x633   :  { %v616_v28 = vadd.f32 1.0, %v893_v26 }
 0x635   :  { %v620_v27 = vmul.f32 0.5, %v616_v28 }
 0x637   :  { %v624_v30 = vmul.f32 %v620_v27, %v587_v8 }
 0x639   :  { %v626_v32 = vpack.c.bf16 %v624_v30, %v623_v31 }
 0x63b   :  { %816 = vmatmul.msk.bf16.gmra.mxu0 %vm90_vm0, %v626_v32 }
 0x6a8   :  { %v678_v33 = vpop.f32.mrf.mxu0 }
 0x6a9   :  { %v679_v35 = vadd.f32 %v850_v34, %v678_v33 }
 0x6ab   :  { %v688_v40 = vadd.f32 %v679_v35, %v1109_v6  ;;  %v851_v6 = vld [vmem:[%s1230_s13] ss:$0 sm:$0xff] }
 0x6b0   :  { %v680_v36 = vpop.f32.mrf.mxu0 }
 0x6b1   :  { %v681_v38 = vadd.f32 %v850_v34, %v680_v36 }
 0x6b3   :  { %v689_v41 = vadd.f32 %v681_v38, %v1117_v13 }
 0x6b5   :  { %v692_v42 = vpack.c.bf16 %v689_v41, %v688_v40 }
 0x6b7   :  { %825 = vmatmul.msk.bf16.vlgmr.msrb.gmra.mxu2 %vm116_vm1, %v692_v42 }
 0x6b8   :  { %v683_v39 = vpop.f32.mrf.mxu0 }
 0x6b9   :  { %v684_v43 = vadd.f32 %v850_v34, %v683_v39 }
 0x6bb   :  { %v690_v46 = vadd.f32 %v684_v43, %v1124_v18 }
 0x6c0   :  { %v685_v44 = vpop.f32.mrf.mxu0 }
 0x6c1   :  { %v686_v45 = vadd.f32 %v850_v34, %v685_v44 }
 0x6c3   :  { %v691_v47 = vadd.f32 %v686_v45, %v1132_v24 }
 0x6c5   :  { %v693_v48 = vpack.c.bf16 %v691_v47, %v690_v46 }
 0x6c7   :  { %826 = vmatmul.msk.bf16.gmra.mxu2 %vm116_vm1, %v693_v48 }
 0x73a   :  { %v729_v49 = vpop.f32.mrf.mxu2 }
 0x73b   :  { %v730_v13 = vadd.f32 %v851_v6, %v729_v49 }
 0x73d   :  { %739 = vst [vmem:[%s1231_s14] sm:$0xff] %v730_v13 }
 0x742   :  { %v731_v50 = vpop.f32.mrf.mxu2 }
 0x743   :  { %v732_v51 = vadd.f32 %v851_v6, %v731_v50 }
 0x745   :  { %740 = vst [vmem:[%s1231_s14 + $0x8] sm:$0xff] %v732_v51 }
 0x74a   :  { %v734_v18 = vpop.f32.mrf.mxu2 }
 0x74b   :  { %v735_v24 = vadd.f32 %v851_v6, %v734_v18 }
 0x74d   :  { %741 = vst [vmem:[%s1231_s14 + $0x10] sm:$0xff] %v735_v24 }
 0x752   :  { %v736_v52 = vpop.f32.mrf.mxu2 }
 0x753   :  { %v737_v53 = vadd.f32 %v851_v6, %v736_v52 }
 0x755   :  { %742 = vst [vmem:[%s1231_s14 + $0x18] sm:$0xff] %v737_v53 }

</bundles_post_ra>
